<compile_context>
chip_gen: v7x
topology: tpu7x:2x2x1
jax: 0.10.0
libtpu: 0.0.40
codegen_flags: <defaults>
</compile_context>

<pallas_src>
import functools

import jax
import jax.numpy as jnp
from jax.experimental import pallas as pl
from jax.experimental.pallas import tpu as pltpu


def _bottleneck_kernel(x_ref, w1_ref, b1_ref, w2_ref, b2_ref, w3_ref, b3_ref,
                       mask_ref, o_ref, *, W, L):
    """Fused Bottleneck on one lane-dense (C, L = nb*H*W) tile."""
    x = x_ref[...]                                                  # (cin, L)

    # ---- conv1 (1x1) + folded BN1 + ReLU : one MXU dot -------------------------------
    h1 = jnp.dot(w1_ref[...], x, preferred_element_type=jnp.float32)
    h1 = jnp.maximum(h1 + b1_ref[...], 0.0)                         # (planes, L)

    # ---- conv2 (3x3, stride=1, pad=1) + folded BN2 + ReLU ----------------------------
    # 9 taps = XLU lane rolls of h1; zero padding comes from the host-precomputed edge
    # masks (one multiply per tap); each tap feeds a small MXU dot, so there is no long
    # serial VPU MAC chain.  Rolls wrap across the folded batch axis, but every wrapped
    # (out-of-image) position is zeroed by the mask, so the result is exact.
    acc = None
    for k in range(9):
        dh, dw = k // 3 - 1, k % 3 - 1
        shift = dh * W + dw
        tap = h1 if shift == 0 else pltpu.roll(h1, shift=(-shift) % L, axis=1)
        tap = tap * mask_ref[k:k + 1, :]
        d = jnp.dot(w2_ref[k], tap, preferred_element_type=jnp.float32)
        acc = d if acc is None else acc + d
    h2 = jnp.maximum(acc + b2_ref[...], 0.0)                        # (planes, L)

    # ---- conv3 (1x1) + folded BN3 + identity residual (downsample=None); no final ReLU
    y = jnp.dot(w3_ref[...], h2, preferred_element_type=jnp.float32)
    o_ref[...] = (y + b3_ref[...] + x).astype(o_ref.dtype)


def _fold_bn(gamma, beta, mean, var, eps=1e-5):
    scale = gamma / jnp.sqrt(var + eps)
    return scale, beta - mean * scale


def _fold_params(params):
    """Fold eval-mode BN into conv weights (exact) + per-channel biases."""
    s1, b1 = _fold_bn(params["bn1_g"], params["bn1_b"], params["bn1_m"], params["bn1_v"])
    s2, b2 = _fold_bn(params["bn2_g"], params["bn2_b"], params["bn2_m"], params["bn2_v"])
    s3, b3 = _fold_bn(params["bn3_g"], params["bn3_b"], params["bn3_m"], params["bn3_v"])
    w1f = params["w1"] * s1[:, None]                    # (planes, cin)
    w2f = params["w2"] * s2[:, None, None, None]        # (planes, planes, 3, 3)  OIHW
    w3f = params["w3"] * s3[:, None]                    # (cout, planes)
    return w1f, b1, w2f, b2, w3f, b3


def _edge_masks(H, W, nb):
    """(9, nb*H*W) f32 validity masks for the 3x3 taps (zero-padding semantics)."""
    q = jnp.arange(H * W, dtype=jnp.int32)
    h, w = q // W, q % W
    rows = []
    for k in range(9):
        dh, dw = k // 3 - 1, k % 3 - 1
        valid = (h + dh >= 0) & (h + dh < H) & (w + dw >= 0) & (w + dw < W)
        rows.append(valid.astype(jnp.float32))
    m = jnp.stack(rows, axis=0)                         # (9, HW)
    return jnp.tile(m, (1, nb))                         # (9, nb*HW)


@functools.partial(jax.jit, static_argnames=("batch_per_block",))
def bottleneck_forward(x, params, batch_per_block=None):
    """x: (N, Cin, H, W) float32, NCHW.  Returns (N, Cout, H, W), Cout = 2*planes."""
    N, cin, H, W = x.shape
    planes = params["w1"].shape[0]
    cout = params["w3"].shape[0]
    assert cout == cin, "downsample=None requires inplanes == planes * expansion"
    HW = H * W

    # Fold the batch into the lane axis of a single fat grid step: fills vregs (channels
    # on sublanes, nb*H*W on lanes) and amortizes per-step pipeline overhead.  On v7x
    # (2 TensorCores) pass batch_per_block = N // 2 so the "parallel" grid has 2 steps.
    nb = N if batch_per_block is None else batch_per_block
    assert N % nb == 0
    nchunks = N // nb
    L = nb * HW

    w1f, b1, w2f, b2, w3f, b3 = _fold_params(params)
    w2s = jnp.transpose(w2f, (2, 3, 0, 1)).reshape(9, planes, planes)   # [tap, out, in]
    mask = _edge_masks(H, W, nb)                                        # (9, L)

    # Lane-dense layout (chunk, C, nb*HW).  The tiny host-side transpose is layout
    # plumbing so every kernel load/store is an unmasked, lane-dense access.
    x_rows = (x.reshape(nchunks, nb, cin, HW)
               .transpose(0, 2, 1, 3)
               .reshape(nchunks, cin, L))

    kernel = functools.partial(_bottleneck_kernel, W=W, L=L)

    out = pl.pallas_call(
        kernel,
        out_shape=jax.ShapeDtypeStruct((nchunks, cout, L), jnp.float32),
        grid=(nchunks,),
        in_specs=[
            pl.BlockSpec((None, cin, L), lambda n: (n, 0, 0)),         # x (lane-dense)
            pl.BlockSpec((planes, cin), lambda n: (0, 0)),             # conv1 weight (O,I)
            pl.BlockSpec((planes, 1), lambda n: (0, 0)),               # bias1
            pl.BlockSpec((9, planes, planes), lambda n: (0, 0, 0)),    # conv2 weight [tap,O,I]
            pl.BlockSpec((planes, 1), lambda n: (0, 0)),               # bias2
            pl.BlockSpec((cout, planes), lambda n: (0, 0)),            # conv3 weight (O,I)
            pl.BlockSpec((cout, 1), lambda n: (0, 0)),                 # bias3
            pl.BlockSpec((9, L), lambda n: (0, 0)),                    # 3x3 edge masks
        ],
        out_specs=pl.BlockSpec((None, cout, L), lambda n: (n, 0, 0)),
        compiler_params=pltpu.CompilerParams(
            dimension_semantics=("parallel",),
            vmem_limit_bytes=16 * 1024 * 1024,   # footprint is only a few hundred KB
        ),
    )(x_rows, w1f, b1.reshape(planes, 1), w2s, b2.reshape(planes, 1),
      w3f, b3.reshape(cout, 1), mask)

    return (out.reshape(nchunks, cout, nb, HW)
               .transpose(0, 2, 1, 3)
               .reshape(N, cout, H, W))


def bottleneck_reference(x, params):
    """Pure-JAX reference with the same eval-mode BN folding, NCHW in/out."""
    w1f, b1, w2f, b2, w3f, b3 = _fold_params(params)
    h = jnp.einsum("nchw,oc->nohw", x, w1f) + b1[None, :, None, None]
    h = jnp.maximum(h, 0.0)
    h = jax.lax.conv_general_dilated(
        h, w2f, window_strides=(1, 1), padding=((1, 1), (1, 1)),
        dimension_numbers=("NCHW", "OIHW", "NCHW")) + b2[None, :, None, None]
    h = jnp.maximum(h, 0.0)
    y = jnp.einsum("nchw,oc->nohw", h, w3f) + b3[None, :, None, None]
    return y + x          # downsample=None, no_relu=True


def make_params(key, inplanes, planes, expansion=2):
    cout = planes * expansion
    ks = jax.random.split(key, 15)

    def bn(kg, kb, km, kv, n):
        return (1.0 + 0.1 * jax.random.normal(kg, (n,), jnp.float32),
                0.1 * jax.random.normal(kb, (n,), jnp.float32),
                0.1 * jax.random.normal(km, (n,), jnp.float32),
                0.1 * jnp.abs(jax.random.normal(kv, (n,), jnp.float32)) + 0.5)

    g1, b1, m1, v1 = bn(ks[0], ks[1], ks[2], ks[3], planes)
    g2, b2, m2, v2 = bn(ks[4], ks[5], ks[6], ks[7], planes)
    g3, b3, m3, v3 = bn(ks[8], ks[9], ks[10], ks[11], cout)
    return {
        "w1": 0.3 * jax.random.normal(ks[12], (planes, inplanes), jnp.float32),
        "w2": 0.2 * jax.random.normal(ks[13], (planes, planes, 3, 3), jnp.float32),
        "w3": 0.3 * jax.random.normal(ks[14], (cout, planes), jnp.float32),
        "bn1_g": g1, "bn1_b": b1, "bn1_m": m1, "bn1_v": v1,
        "bn2_g": g2, "bn2_b": b2, "bn2_m": m2, "bn2_v": v2,
        "bn3_g": g3, "bn3_b": b3, "bn3_m": m3, "bn3_v": v3,
    }


if __name__ == "__main__":
    # Bottleneck(inplanes=8, planes=4) -> expansion=2 -> Cout=8=inplanes, so the
    # identity residual (downsample=None, stride=1) type-checks.
    N, inplanes, planes, H, W = 2, 8, 4, 16, 16
    key = jax.random.PRNGKey(0)
    kx, kp = jax.random.split(key)

    x = jax.random.normal(kx, (N, inplanes, H, W), jnp.float32)
    params = make_params(kp, inplanes, planes)

    out = bottleneck_forward(x, params)
    jax.block_until_ready(out)

    ref = bottleneck_reference(x, params)
    assert out.shape == (N, planes * 2, H, W)
    err = float(jnp.max(jnp.abs(out - ref)))
    assert jnp.allclose(out, ref, atol=1e-3, rtol=1e-3), (
        "mismatch vs reference, max abs err = %e" % err)

    print("KERNEL_OK")
</pallas_src>

<mosaic_0001>
module attributes {stable_mosaic.version = 11 : i64} {
  func.func @_bottleneck_kernel(%arg0: i32, %arg1: memref<1x8x512xf32, #tpu.memory_space<vmem>>, %arg2: memref<4x8xf32, #tpu.memory_space<vmem>>, %arg3: memref<4x1xf32, #tpu.memory_space<vmem>>, %arg4: memref<9x4x4xf32, #tpu.memory_space<vmem>>, %arg5: memref<4x1xf32, #tpu.memory_space<vmem>>, %arg6: memref<8x4xf32, #tpu.memory_space<vmem>>, %arg7: memref<8x1xf32, #tpu.memory_space<vmem>>, %arg8: memref<9x512xf32, #tpu.memory_space<vmem>>, %arg9: memref<1x8x512xf32, #tpu.memory_space<vmem>>) attributes {dimension_semantics = [#tpu.dimension_semantics<parallel>], iteration_bounds = array<i64: 1>, scalar_prefetch = 0 : i64, scratch_operands = 0 : i64, tpu.core_type = #tpu.core_type<tc>, window_params = [{transform_indices = @transform_0, window_bounds = array<i64: 1, 8, 512>}, {pipeline_mode = #tpu.pipeline_mode<synchronous>, transform_indices = @transform_1, window_bounds = array<i64: 4, 8>}, {pipeline_mode = #tpu.pipeline_mode<synchronous>, transform_indices = @transform_2, window_bounds = array<i64: 4, 1>}, {pipeline_mode = #tpu.pipeline_mode<synchronous>, transform_indices = @transform_3, window_bounds = array<i64: 9, 4, 4>}, {pipeline_mode = #tpu.pipeline_mode<synchronous>, transform_indices = @transform_4, window_bounds = array<i64: 4, 1>}, {pipeline_mode = #tpu.pipeline_mode<synchronous>, transform_indices = @transform_5, window_bounds = array<i64: 8, 4>}, {pipeline_mode = #tpu.pipeline_mode<synchronous>, transform_indices = @transform_6, window_bounds = array<i64: 8, 1>}, {pipeline_mode = #tpu.pipeline_mode<synchronous>, transform_indices = @transform_7, window_bounds = array<i64: 9, 512>}, {transform_indices = @transform_8, window_bounds = array<i64: 1, 8, 512>}]} {
    %c0 = arith.constant 0 : index
    %c0_0 = arith.constant 0 : index
    %c0_1 = arith.constant 0 : index
    %0 = vector.load %arg1[%c0, %c0_0, %c0_1] : memref<1x8x512xf32, #tpu.memory_space<vmem>>, vector<1x8x512xf32>
    %1 = vector.shape_cast %0 : vector<1x8x512xf32> to vector<8x512xf32>
    %c0_2 = arith.constant 0 : index
    %c0_3 = arith.constant 0 : index
    %2 = vector.load %arg2[%c0_2, %c0_3] : memref<4x8xf32, #tpu.memory_space<vmem>>, vector<4x8xf32>
    %cst = arith.constant dense<0.000000e+00> : vector<4x512xf32>
    %3 = tpu.matmul %2, %1, %cst {dimension_numbers = #tpu.dot_dimension_numbers<[1], [0], [0], [1], [0, 0, 1, 1], [], []>} : vector<4x8xf32>, vector<8x512xf32>, vector<4x512xf32> -> vector<4x512xf32>
    %c0_4 = arith.constant 0 : index
    %c0_5 = arith.constant 0 : index
    %4 = vector.load %arg3[%c0_4, %c0_5] : memref<4x1xf32, #tpu.memory_space<vmem>>, vector<4x1xf32>
    %5 = vector.broadcast %4 : vector<4x1xf32> to vector<4x512xf32>
    %6 = arith.addf %3, %5 : vector<4x512xf32>
    %cst_6 = arith.constant 0.000000e+00 : f32
    %7 = vector.broadcast %cst_6 : f32 to vector<4x512xf32>
    %8 = arith.maximumf %6, %7 : vector<4x512xf32>
    %c17_i32 = arith.constant 17 : i32
    %9 = tpu.dynamic_rotate %8 by %c17_i32 dim 1 : vector<4x512xf32>, i32 -> vector<4x512xf32>
    %c0_7 = arith.constant 0 : index
    %c0_8 = arith.constant 0 : index
    %10 = vector.load %arg8[%c0_7, %c0_8] : memref<9x512xf32, #tpu.memory_space<vmem>>, vector<1x512xf32>
    %11 = vector.broadcast %10 : vector<1x512xf32> to vector<4x512xf32>
    %12 = arith.mulf %9, %11 : vector<4x512xf32>
    %c0_9 = arith.constant 0 : index
    %c0_10 = arith.constant 0 : index
    %c0_11 = arith.constant 0 : index
    %13 = vector.load %arg4[%c0_9, %c0_10, %c0_11] : memref<9x4x4xf32, #tpu.memory_space<vmem>>, vector<1x4x4xf32>
    %14 = vector.shape_cast %13 : vector<1x4x4xf32> to vector<4x4xf32>
    %cst_12 = arith.constant dense<0.000000e+00> : vector<4x512xf32>
    %15 = tpu.matmul %14, %12, %cst_12 {dimension_numbers = #tpu.dot_dimension_numbers<[1], [0], [0], [1], [0, 0, 1, 1], [], []>} : vector<4x4xf32>, vector<4x512xf32>, vector<4x512xf32> -> vector<4x512xf32>
    %c16_i32 = arith.constant 16 : i32
    %16 = tpu.dynamic_rotate %8 by %c16_i32 dim 1 : vector<4x512xf32>, i32 -> vector<4x512xf32>
    %c1 = arith.constant 1 : index
    %c0_13 = arith.constant 0 : index
    %17 = vector.load %arg8[%c1, %c0_13] : memref<9x512xf32, #tpu.memory_space<vmem>>, vector<1x512xf32>
    %18 = vector.broadcast %17 : vector<1x512xf32> to vector<4x512xf32>
    %19 = arith.mulf %16, %18 : vector<4x512xf32>
    %c1_14 = arith.constant 1 : index
    %c0_15 = arith.constant 0 : index
    %c0_16 = arith.constant 0 : index
    %20 = vector.load %arg4[%c1_14, %c0_15, %c0_16] : memref<9x4x4xf32, #tpu.memory_space<vmem>>, vector<1x4x4xf32>
    %21 = vector.shape_cast %20 : vector<1x4x4xf32> to vector<4x4xf32>
    %cst_17 = arith.constant dense<0.000000e+00> : vector<4x512xf32>
    %22 = tpu.matmul %21, %19, %cst_17 {dimension_numbers = #tpu.dot_dimension_numbers<[1], [0], [0], [1], [0, 0, 1, 1], [], []>} : vector<4x4xf32>, vector<4x512xf32>, vector<4x512xf32> -> vector<4x512xf32>
    %23 = arith.addf %15, %22 : vector<4x512xf32>
    %c15_i32 = arith.constant 15 : i32
    %24 = tpu.dynamic_rotate %8 by %c15_i32 dim 1 : vector<4x512xf32>, i32 -> vector<4x512xf32>
    %c2 = arith.constant 2 : index
    %c0_18 = arith.constant 0 : index
    %25 = vector.load %arg8[%c2, %c0_18] : memref<9x512xf32, #tpu.memory_space<vmem>>, vector<1x512xf32>
    %26 = vector.broadcast %25 : vector<1x512xf32> to vector<4x512xf32>
    %27 = arith.mulf %24, %26 : vector<4x512xf32>
    %c2_19 = arith.constant 2 : index
    %c0_20 = arith.constant 0 : index
    %c0_21 = arith.constant 0 : index
    %28 = vector.load %arg4[%c2_19, %c0_20, %c0_21] : memref<9x4x4xf32, #tpu.memory_space<vmem>>, vector<1x4x4xf32>
    %29 = vector.shape_cast %28 : vector<1x4x4xf32> to vector<4x4xf32>
    %cst_22 = arith.constant dense<0.000000e+00> : vector<4x512xf32>
    %30 = tpu.matmul %29, %27, %cst_22 {dimension_numbers = #tpu.dot_dimension_numbers<[1], [0], [0], [1], [0, 0, 1, 1], [], []>} : vector<4x4xf32>, vector<4x512xf32>, vector<4x512xf32> -> vector<4x512xf32>
    %31 = arith.addf %23, %30 : vector<4x512xf32>
    %c1_i32 = arith.constant 1 : i32
    %32 = tpu.dynamic_rotate %8 by %c1_i32 dim 1 : vector<4x512xf32>, i32 -> vector<4x512xf32>
    %c3 = arith.constant 3 : index
    %c0_23 = arith.constant 0 : index
    %33 = vector.load %arg8[%c3, %c0_23] : memref<9x512xf32, #tpu.memory_space<vmem>>, vector<1x512xf32>
    %34 = vector.broadcast %33 : vector<1x512xf32> to vector<4x512xf32>
    %35 = arith.mulf %32, %34 : vector<4x512xf32>
    %c3_24 = arith.constant 3 : index
    %c0_25 = arith.constant 0 : index
    %c0_26 = arith.constant 0 : index
    %36 = vector.load %arg4[%c3_24, %c0_25, %c0_26] : memref<9x4x4xf32, #tpu.memory_space<vmem>>, vector<1x4x4xf32>
    %37 = vector.shape_cast %36 : vector<1x4x4xf32> to vector<4x4xf32>
    %cst_27 = arith.constant dense<0.000000e+00> : vector<4x512xf32>
    %38 = tpu.matmul %37, %35, %cst_27 {dimension_numbers = #tpu.dot_dimension_numbers<[1], [0], [0], [1], [0, 0, 1, 1], [], []>} : vector<4x4xf32>, vector<4x512xf32>, vector<4x512xf32> -> vector<4x512xf32>
    %39 = arith.addf %31, %38 : vector<4x512xf32>
    %c4 = arith.constant 4 : index
    %c0_28 = arith.constant 0 : index
    %40 = vector.load %arg8[%c4, %c0_28] : memref<9x512xf32, #tpu.memory_space<vmem>>, vector<1x512xf32>
    %41 = vector.broadcast %40 : vector<1x512xf32> to vector<4x512xf32>
    %42 = arith.mulf %8, %41 : vector<4x512xf32>
    %c4_29 = arith.constant 4 : index
    %c0_30 = arith.constant 0 : index
    %c0_31 = arith.constant 0 : index
    %43 = vector.load %arg4[%c4_29, %c0_30, %c0_31] : memref<9x4x4xf32, #tpu.memory_space<vmem>>, vector<1x4x4xf32>
    %44 = vector.shape_cast %43 : vector<1x4x4xf32> to vector<4x4xf32>
    %cst_32 = arith.constant dense<0.000000e+00> : vector<4x512xf32>
    %45 = tpu.matmul %44, %42, %cst_32 {dimension_numbers = #tpu.dot_dimension_numbers<[1], [0], [0], [1], [0, 0, 1, 1], [], []>} : vector<4x4xf32>, vector<4x512xf32>, vector<4x512xf32> -> vector<4x512xf32>
    %46 = arith.addf %39, %45 : vector<4x512xf32>
    %c511_i32 = arith.constant 511 : i32
    %47 = tpu.dynamic_rotate %8 by %c511_i32 dim 1 : vector<4x512xf32>, i32 -> vector<4x512xf32>
    %c5 = arith.constant 5 : index
    %c0_33 = arith.constant 0 : index
    %48 = vector.load %arg8[%c5, %c0_33] : memref<9x512xf32, #tpu.memory_space<vmem>>, vector<1x512xf32>
    %49 = vector.broadcast %48 : vector<1x512xf32> to vector<4x512xf32>
    %50 = arith.mulf %47, %49 : vector<4x512xf32>
    %c5_34 = arith.constant 5 : index
    %c0_35 = arith.constant 0 : index
    %c0_36 = arith.constant 0 : index
    %51 = vector.load %arg4[%c5_34, %c0_35, %c0_36] : memref<9x4x4xf32, #tpu.memory_space<vmem>>, vector<1x4x4xf32>
    %52 = vector.shape_cast %51 : vector<1x4x4xf32> to vector<4x4xf32>
    %cst_37 = arith.constant dense<0.000000e+00> : vector<4x512xf32>
    %53 = tpu.matmul %52, %50, %cst_37 {dimension_numbers = #tpu.dot_dimension_numbers<[1], [0], [0], [1], [0, 0, 1, 1], [], []>} : vector<4x4xf32>, vector<4x512xf32>, vector<4x512xf32> -> vector<4x512xf32>
    %54 = arith.addf %46, %53 : vector<4x512xf32>
    %c497_i32 = arith.constant 497 : i32
    %55 = tpu.dynamic_rotate %8 by %c497_i32 dim 1 : vector<4x512xf32>, i32 -> vector<4x512xf32>
    %c6 = arith.constant 6 : index
    %c0_38 = arith.constant 0 : index
    %56 = vector.load %arg8[%c6, %c0_38] : memref<9x512xf32, #tpu.memory_space<vmem>>, vector<1x512xf32>
    %57 = vector.broadcast %56 : vector<1x512xf32> to vector<4x512xf32>
    %58 = arith.mulf %55, %57 : vector<4x512xf32>
    %c6_39 = arith.constant 6 : index
    %c0_40 = arith.constant 0 : index
    %c0_41 = arith.constant 0 : index
    %59 = vector.load %arg4[%c6_39, %c0_40, %c0_41] : memref<9x4x4xf32, #tpu.memory_space<vmem>>, vector<1x4x4xf32>
    %60 = vector.shape_cast %59 : vector<1x4x4xf32> to vector<4x4xf32>
    %cst_42 = arith.constant dense<0.000000e+00> : vector<4x512xf32>
    %61 = tpu.matmul %60, %58, %cst_42 {dimension_numbers = #tpu.dot_dimension_numbers<[1], [0], [0], [1], [0, 0, 1, 1], [], []>} : vector<4x4xf32>, vector<4x512xf32>, vector<4x512xf32> -> vector<4x512xf32>
    %62 = arith.addf %54, %61 : vector<4x512xf32>
    %c496_i32 = arith.constant 496 : i32
    %63 = tpu.dynamic_rotate %8 by %c496_i32 dim 1 : vector<4x512xf32>, i32 -> vector<4x512xf32>
    %c7 = arith.constant 7 : index
    %c0_43 = arith.constant 0 : index
    %64 = vector.load %arg8[%c7, %c0_43] : memref<9x512xf32, #tpu.memory_space<vmem>>, vector<1x512xf32>
    %65 = vector.broadcast %64 : vector<1x512xf32> to vector<4x512xf32>
    %66 = arith.mulf %63, %65 : vector<4x512xf32>
    %c7_44 = arith.constant 7 : index
    %c0_45 = arith.constant 0 : index
    %c0_46 = arith.constant 0 : index
    %67 = vector.load %arg4[%c7_44, %c0_45, %c0_46] : memref<9x4x4xf32, #tpu.memory_space<vmem>>, vector<1x4x4xf32>
    %68 = vector.shape_cast %67 : vector<1x4x4xf32> to vector<4x4xf32>
    %cst_47 = arith.constant dense<0.000000e+00> : vector<4x512xf32>
    %69 = tpu.matmul %68, %66, %cst_47 {dimension_numbers = #tpu.dot_dimension_numbers<[1], [0], [0], [1], [0, 0, 1, 1], [], []>} : vector<4x4xf32>, vector<4x512xf32>, vector<4x512xf32> -> vector<4x512xf32>
    %70 = arith.addf %62, %69 : vector<4x512xf32>
    %c495_i32 = arith.constant 495 : i32
    %71 = tpu.dynamic_rotate %8 by %c495_i32 dim 1 : vector<4x512xf32>, i32 -> vector<4x512xf32>
    %c8 = arith.constant 8 : index
    %c0_48 = arith.constant 0 : index
    %72 = vector.load %arg8[%c8, %c0_48] : memref<9x512xf32, #tpu.memory_space<vmem>>, vector<1x512xf32>
    %73 = vector.broadcast %72 : vector<1x512xf32> to vector<4x512xf32>
    %74 = arith.mulf %71, %73 : vector<4x512xf32>
    %c8_49 = arith.constant 8 : index
    %c0_50 = arith.constant 0 : index
    %c0_51 = arith.constant 0 : index
    %75 = vector.load %arg4[%c8_49, %c0_50, %c0_51] : memref<9x4x4xf32, #tpu.memory_space<vmem>>, vector<1x4x4xf32>
    %76 = vector.shape_cast %75 : vector<1x4x4xf32> to vector<4x4xf32>
    %cst_52 = arith.constant dense<0.000000e+00> : vector<4x512xf32>
    %77 = tpu.matmul %76, %74, %cst_52 {dimension_numbers = #tpu.dot_dimension_numbers<[1], [0], [0], [1], [0, 0, 1, 1], [], []>} : vector<4x4xf32>, vector<4x512xf32>, vector<4x512xf32> -> vector<4x512xf32>
    %78 = arith.addf %70, %77 : vector<4x512xf32>
    %c0_53 = arith.constant 0 : index
    %c0_54 = arith.constant 0 : index
    %79 = vector.load %arg5[%c0_53, %c0_54] : memref<4x1xf32, #tpu.memory_space<vmem>>, vector<4x1xf32>
    %80 = vector.broadcast %79 : vector<4x1xf32> to vector<4x512xf32>
    %81 = arith.addf %78, %80 : vector<4x512xf32>
    %cst_55 = arith.constant 0.000000e+00 : f32
    %82 = vector.broadcast %cst_55 : f32 to vector<4x512xf32>
    %83 = arith.maximumf %81, %82 : vector<4x512xf32>
    %c0_56 = arith.constant 0 : index
    %c0_57 = arith.constant 0 : index
    %84 = vector.load %arg6[%c0_56, %c0_57] : memref<8x4xf32, #tpu.memory_space<vmem>>, vector<8x4xf32>
    %cst_58 = arith.constant dense<0.000000e+00> : vector<8x512xf32>
    %85 = tpu.matmul %84, %83, %cst_58 {dimension_numbers = #tpu.dot_dimension_numbers<[1], [0], [0], [1], [0, 0, 1, 1], [], []>} : vector<8x4xf32>, vector<4x512xf32>, vector<8x512xf32> -> vector<8x512xf32>
    %c0_59 = arith.constant 0 : index
    %c0_60 = arith.constant 0 : index
    %86 = vector.load %arg7[%c0_59, %c0_60] : memref<8x1xf32, #tpu.memory_space<vmem>>, vector<8x1xf32>
    %87 = vector.broadcast %86 : vector<8x1xf32> to vector<8x512xf32>
    %88 = arith.addf %85, %87 : vector<8x512xf32>
    %89 = arith.addf %88, %1 : vector<8x512xf32>
    %c0_61 = arith.constant 0 : index
    %c0_62 = arith.constant 0 : index
    %c0_63 = arith.constant 0 : index
    %90 = vector.load %arg9[%c0_61, %c0_62, %c0_63] : memref<1x8x512xf32, #tpu.memory_space<vmem>>, vector<1x8x512xf32>
    %91 = vector.shape_cast %90 : vector<1x8x512xf32> to vector<8x512xf32>
    %92 = vector.shape_cast %89 : vector<8x512xf32> to vector<1x8x512xf32>
    tpu.vector_store %arg9[%c0_61, %c0_62, %c0_63], %92 {strides = array<i32>} : memref<1x8x512xf32, #tpu.memory_space<vmem>>, vector<1x8x512xf32>,
    return
  }
  func.func @transform_0(%arg0: i32) -> (i32, i32, i32) {
    %c0_i32 = arith.constant 0 : i32
    %c0_i32_0 = arith.constant 0 : i32
    %c0_i32_1 = arith.constant 0 : i32
    return %arg0, %c0_i32, %c0_i32_0 : i32, i32, i32
  }
  func.func @transform_1(%arg0: i32) -> (i32, i32) {
    %c0_i32 = arith.constant 0 : i32
    %c0_i32_0 = arith.constant 0 : i32
    %c0_i32_1 = arith.constant 0 : i32
    return %c0_i32, %c0_i32_0 : i32, i32
  }
  func.func @transform_2(%arg0: i32) -> (i32, i32) {
    %c0_i32 = arith.constant 0 : i32
    %c0_i32_0 = arith.constant 0 : i32
    %c0_i32_1 = arith.constant 0 : i32
    return %c0_i32, %c0_i32_0 : i32, i32
  }
  func.func @transform_3(%arg0: i32) -> (i32, i32, i32) {
    %c0_i32 = arith.constant 0 : i32
    %c0_i32_0 = arith.constant 0 : i32
    %c0_i32_1 = arith.constant 0 : i32
    %c0_i32_2 = arith.constant 0 : i32
    return %c0_i32, %c0_i32_0, %c0_i32_1 : i32, i32, i32
  }
  func.func @transform_4(%arg0: i32) -> (i32, i32) {
    %c0_i32 = arith.constant 0 : i32
    %c0_i32_0 = arith.constant 0 : i32
    %c0_i32_1 = arith.constant 0 : i32
    return %c0_i32, %c0_i32_0 : i32, i32
  }
  func.func @transform_5(%arg0: i32) -> (i32, i32) {
    %c0_i32 = arith.constant 0 : i32
    %c0_i32_0 = arith.constant 0 : i32
    %c0_i32_1 = arith.constant 0 : i32
    return %c0_i32, %c0_i32_0 : i32, i32
  }
  func.func @transform_6(%arg0: i32) -> (i32, i32) {
    %c0_i32 = arith.constant 0 : i32
    %c0_i32_0 = arith.constant 0 : i32
    %c0_i32_1 = arith.constant 0 : i32
    return %c0_i32, %c0_i32_0 : i32, i32
  }
  func.func @transform_7(%arg0: i32) -> (i32, i32) {
    %c0_i32 = arith.constant 0 : i32
    %c0_i32_0 = arith.constant 0 : i32
    %c0_i32_1 = arith.constant 0 : i32
    return %c0_i32, %c0_i32_0 : i32, i32
  }
  func.func @transform_8(%arg0: i32) -> (i32, i32, i32) {
    %c0_i32 = arith.constant 0 : i32
    %c0_i32_0 = arith.constant 0 : i32
    %c0_i32_1 = arith.constant 0 : i32
    return %arg0, %c0_i32, %c0_i32_0 : i32, i32, i32
  }
}

</mosaic_0001>

<bundles_post_ra>
// kernel: bottleneck_forward.1
= control target key start
LH: loop header
LB: loop body
LE: loop exit
PB: predicated region body
PF: predicated region fallthrough
CT: control target
= control target key end

     0   :  { %v2310_v3 = vmov 0.0   ;;  %vm40_vm0 = vcmask 64512   ;;  %v2311_v7 = vmov 0   ;;  %s2315_s17 = smov 1   ;;  %s2316_s18 = smov 127   ;;  %v198_v23 = vlaneseq  ;;  %s2678_s0 = inlined_call_operand.vmem [shape: f32[1,8,512], index: 0, kind: input, shape index: {}]   ;;  %s2679_s1 = inlined_call_operand.vmem [shape: f32[4,8], index: 1, kind: input, shape index: {}]   ;;  %s2680_s2 = inlined_call_operand.vmem [shape: f32[4,1], index: 2, kind: input, shape index: {}]   ;;  %s2681_s6 = inlined_call_operand.vmem [shape: f32[8,1], index: 6, kind: input, shape index: {}]   ;;  %s2682_s4 = inlined_call_operand.vmem [shape: f32[4,1], index: 4, kind: input, shape index: {}]   ;;  %s2683_s7 = inlined_call_operand.vmem [shape: f32[9,512], index: 7, kind: input, shape index: {}]   ;;  %s2684_s3 = inlined_call_operand.vmem [shape: f32[9,4,4], index: 3, kind: input, shape index: {}]   ;;  %s2685_s5 = inlined_call_operand.vmem [shape: f32[8,4], index: 5, kind: input, shape index: {}]   ;;  %s2686_s8 = inlined_call_operand.vmem [shape: f32[1,8,512], index: 8, kind: output, shape index: {}]  }
   0x1   :  { %v2368_v0 = vld [vmem:[%s2678_s0 + $0x8] sm:$0xff]  ;;  %v2373_v1 = vld [vmem:[%s2678_s0 + $0x18] sm:$0xff]  ;;  %v2378_v2 = vld [vmem:[%s2678_s0] sm:$0xff]  ;;  %108 = vmatprep.mubr.f32.mxu0 %v2310_v3  ;;  %179 = vmatprep.mubr.f32.mxu1 %v2310_v3  ;;  %s2317_s19 = smov 113   ;;  %s2318_s20 = smov 112   ;;  %vm278_vm2 = vcmask 1043456  }
   0x2   :  { %44 = vmatprep.subr.mxu0 %v2368_v0  ;;  %115 = vmatprep.subr.mxu1 %v2373_v1  ;;  %v2387_v4 = vld [vmem:[%s2678_s0 + $0x10] sm:$0xff]  ;;  %v33_v5 = vld [vmem:[%s2679_s1] sm:$0xf]  ;;  %s2312_s0 = smov 16   ;;  %s2313_s1 = smov 17   ;;  %v208_v24 = vshrl.u32 %v198_v23, 7 }
   0x3   :  { %45 = vmatpush1.msra.mxu0 %v2378_v2  ;;  %116 = vmatpush1.msra.mxu1 %v2387_v4  ;;  %v34_v6 = vld [vmem:[%s2680_s2] sm:$0xf]  ;;  %s2314_s2 = smov 15   ;;  %s2319_s21 = smov 111   ;;  %v2445_v25 = vand.u32 127, %v198_v23  ;;  %vm274_vm4 = vcmask 31744  }
   0x4   :  { %2188 = vmatmul.mubr.msk.f32.vlgmr.msra.gmra.mrb[0].mxu0 %vm40_vm0, %v33_v5  ;;  %2189 = vmatmul.mubr.msk.f32.vlgmr.msra.gmra.mrb[0].mxu1 %vm40_vm0, %v33_v5  ;;  %v2013_v21 = vld [vmem:[%s2681_s6] sm:$0xff]  ;;  %v2450_v27 = vsub.s32 1, %v208_v24  ;;  %v2452_v30 = vsub.s32 2, %v208_v24  ;;  %v2454_v31 = vsub.s32 0, %v208_v24  ;;  %v2456_v32 = vsub.s32 3, %v208_v24 }
   0x5   :  { %2308 = vset.pattern.permute.xlu0 %v2311_v7  ;;  %355 = vmatprep.mubr.f32.mxu0 %v2310_v3  ;;  %v1998_v22 = vld [vmem:[%s2682_s4] sm:$0xf]  ;;  %vm240_vm1 = vcmp.lt.s32.totalorder %v2445_v25, 16  ;;  %vm200_vm3 = vcmp.lt.s32.totalorder %v2445_v25, 17  ;;  %v2191_v49 = vld [vmem:[%s2684_s3 + $0x4] sm:$0xf] }
   0x6   :  { %37 = vperm.xlu0 %2308, %v34_v6   ;;  %426 = vmatprep.mubr.f32.mxu1 %v2310_v3  ;;  %v2190_v26 = vld [vmem:[%s2683_s7 + $0x1] ss:$8 sm:$0xf]  ;;  %v205_v34 = vld [vmem:[%s2683_s7] ss:$8 sm:$0xf] }
   0x7   :  { %2309 = vset.pattern.permute.xlu1 %v2311_v7  ;;  %v255_v33 = vrot.slane %v2190_v26, %v2450_v27  ;;  %v259_v35 = vrot.slane %v2190_v26, %v2452_v30  ;;  %v251_v36 = vrot.slane %v2190_v26, %v2454_v31  ;;  %v263_v37 = vrot.slane %v2190_v26, %v2456_v32  ;;  %v2204_v57 = vld [vmem:[%s2683_s7 + $0x2] ss:$8 sm:$0xf] }
   0x8   :  { %v214_v40 = vrot.slane %v205_v34, %v2450_v27  ;;  %v218_v53 = vrot.slane %v205_v34, %v2452_v30  ;;  %v210_v55 = vrot.slane %v205_v34, %v2454_v31  ;;  %v222_v56 = vrot.slane %v205_v34, %v2456_v32 }
   0x9   :  { %vm598_vm5 = vcmp.lt.s32.totalorder %v2445_v25, 15  ;;  %v613_v7 = vrot.slane %v2204_v57, %v2450_v27  ;;  %vm801_vm6 = vcmp.lt.s32.totalorder %v2445_v25, 1  ;;  %vm1194_vm7 = vcmp.lt.s32.totalorder %v2445_v25, 127 }
   0xa   :  { %vm1397_vm8 = vcmp.lt.s32.totalorder %v2445_v25, 113  ;;  %vm1600_vm9 = vcmp.lt.s32.totalorder %v2445_v25, 112  ;;  %vm1803_vm10 = vcmp.lt.s32.totalorder %v2445_v25, 111 }
  0x85   :  { %v38_v8 = vpop.permute.xlu0 %37 }
  0xd7   :  { %v110_v9 = vpop.f32.mrb[0].mxu0  ;;  %v181_v10 = vpop.f32.mrb[0].mxu1 }
  0xd8   :  { %v111_v11 = vadd.f32 %v110_v9, %v38_v8  ;;  %v182_v12 = vadd.f32 %v181_v10, %v38_v8  ;;  %v112_v13 = vpop.f32.mrb[1].mxu0  ;;  %v183_v14 = vpop.f32.mrb[1].mxu1 }
  0xd9   :  { %v113_v17 = vadd.f32 %v112_v13, %v38_v8  ;;  %v184_v18 = vadd.f32 %v183_v14, %v38_v8  ;;  %v231_v8 = vld [vmem:[%s2684_s3] sm:$0xf]  ;;  %v609_v14 = vrot.slane %v2204_v57, %v2454_v31 }
  0xda   :  { %v2399_v15 = vmax.f32 %v111_v11, 0.0  ;;  %v2401_v16 = vmax.f32 %v182_v12, 0.0  ;;  %v617_v12 = vrot.slane %v2204_v57, %v2452_v30 }
  0xdb   :  { %v2405_v19 = vmax.f32 %v113_v17, 0.0  ;;  %v2407_v20 = vmax.f32 %v184_v18, 0.0  ;;  %v621_v17 = vrot.slane %v2204_v57, %v2456_v32  ;;  %v2212_v18 = vld [vmem:[%s2683_s7 + $0x3] ss:$8 sm:$0xf] }
  0xdc   :  { %236 = vrot.lane.b32.xlu1 %v2401_v16, %s2312_s0  ;;  %232 = vrot.lane.b32.xlu0 %v2399_v15, %s2312_s0  ;;  %v816_v34 = vrot.slane %v2212_v18, %v2450_v27  ;;  %v2213_v57 = vld [vmem:[%s2684_s3 + $0xc] sm:$0xf] }
  0xe0   :  { %234 = vrot.lane.b32.xlu1 %v2405_v19, %s2312_s0  ;;  %238 = vrot.lane.b32.xlu0 %v2407_v20, %s2312_s0 }
  0xe4   :  { %190 = vrot.lane.b32.xlu1 %v2399_v15, %s2313_s1  ;;  %192 = vrot.lane.b32.xlu0 %v2405_v19, %s2313_s1 }
  0xe8   :  { %194 = vrot.lane.b32.xlu1 %v2401_v16, %s2313_s1  ;;  %196 = vrot.lane.b32.xlu0 %v2407_v20, %s2313_s1 }
  0xec   :  { %590 = vrot.lane.b32.xlu1 %v2399_v15, %s2314_s2  ;;  %592 = vrot.lane.b32.xlu0 %v2405_v19, %s2314_s2 }
  0xf0   :  { %594 = vrot.lane.b32.xlu1 %v2401_v16, %s2314_s2  ;;  %596 = vrot.lane.b32.xlu0 %v2407_v20, %s2314_s2 }
  0xf4   :  { %793 = vrot.lane.b32.xlu1 %v2399_v15, %s2315_s17  ;;  %795 = vrot.lane.b32.xlu0 %v2405_v19, %s2315_s17 }
  0xf8   :  { %797 = vrot.lane.b32.xlu1 %v2401_v16, %s2315_s17  ;;  %799 = vrot.lane.b32.xlu0 %v2407_v20, %s2315_s17 }
  0xfc   :  { %1186 = vrot.lane.b32.xlu1 %v2399_v15, %s2316_s18  ;;  %1188 = vrot.lane.b32.xlu0 %v2405_v19, %s2316_s18 }
 0x100   :  { %1190 = vrot.lane.b32.xlu1 %v2401_v16, %s2316_s18  ;;  %1192 = vrot.lane.b32.xlu0 %v2407_v20, %s2316_s18 }
 0x104   :  { %1389 = vrot.lane.b32.xlu1 %v2399_v15, %s2317_s19  ;;  %1391 = vrot.lane.b32.xlu0 %v2405_v19, %s2317_s19 }
 0x108   :  { %1393 = vrot.lane.b32.xlu1 %v2401_v16, %s2317_s19  ;;  %1395 = vrot.lane.b32.xlu0 %v2407_v20, %s2317_s19 }
 0x10c   :  { %1592 = vrot.lane.b32.xlu1 %v2399_v15, %s2318_s20  ;;  %1594 = vrot.lane.b32.xlu0 %v2405_v19, %s2318_s20 }
 0x110   :  { %1596 = vrot.lane.b32.xlu1 %v2401_v16, %s2318_s20  ;;  %1598 = vrot.lane.b32.xlu0 %v2407_v20, %s2318_s20 }
 0x114   :  { %1795 = vrot.lane.b32.xlu1 %v2399_v15, %s2319_s21  ;;  %1797 = vrot.lane.b32.xlu0 %v2405_v19, %s2319_s21 }
 0x118   :  { %1799 = vrot.lane.b32.xlu1 %v2401_v16, %s2319_s21  ;;  %1801 = vrot.lane.b32.xlu0 %v2407_v20, %s2319_s21 }
 0x11c   :  { %2016 = vperm.xlu0 %2308, %v2013_v21   ;;  %2001 = vperm.xlu1 %2309, %v1998_v22  }
 0x14e   :  { %v237_v28 = vpop.permute.xlu1 %236  ;;  %v233_v29 = vpop.permute.xlu0 %232 }
 0x152   :  { %v235_v38 = vpop.permute.xlu1 %234  ;;  %v239_v39 = vpop.permute.xlu0 %238 }
 0x153   :  { %v242_v41 = vsel %vm240_vm1, %v235_v38, %v237_v28  ;;  %v243_v42 = vsel %vm240_vm1, %v233_v29, %v235_v38  ;;  %v241_v43 = vsel %vm240_vm1, %v237_v28, %v239_v39  ;;  %v244_v44 = vsel %vm240_vm1, %v239_v39, %v233_v29  ;;  %v2220_v38 = vld [vmem:[%s2683_s7 + $0x4] ss:$8 sm:$0xf] }
 0x154   :  { %v269_v45 = vmul.f32 %v255_v33, %v243_v42  ;;  %v270_v46 = vmul.f32 %v259_v35, %v242_v41  ;;  %v268_v47 = vmul.f32 %v251_v36, %v244_v44  ;;  %v271_v48 = vmul.f32 %v263_v37, %v241_v43  ;;  %v2205_v35 = vld [vmem:[%s2684_s3 + $0x8] sm:$0xf] }
 0x155   :  { %v812_v42 = vrot.slane %v2212_v18, %v2454_v31  ;;  %v824_v43 = vrot.slane %v2212_v18, %v2456_v32  ;;  %v1006_v44 = vrot.slane %v2220_v38, %v2450_v27 }
 0x156   :  { %v191_v50 = vpop.permute.xlu1 %190  ;;  %2192 = vmatprep.subr.msk.mxu0 %vm278_vm2, %v269_v45  ;;  %2195 = vmatprep.subr.msk.mxu1 %vm278_vm2, %v271_v48  ;;  %v193_v51 = vpop.permute.xlu0 %192 }
 0x157   :  { %v203_v52 = vsel %vm200_vm3, %v191_v50, %v193_v51  ;;  %2193 = vmatpush1.msk.msra.mxu0 %vm278_vm2, %v268_v47  ;;  %2196 = vmatpush1.msk.msra.mxu1 %vm278_vm2, %v270_v46  ;;  %v1002_v47 = vrot.slane %v2220_v38, %v2454_v31 }
 0x158   :  { %v228_v54 = vmul.f32 %v214_v40, %v203_v52  ;;  %2194 = vmatmul.mubr.msk.f32.vlgmr.msra.gmra.mrb[2].mxu0 %vm274_vm4, %v2191_v49  ;;  %2197 = vmatmul.mubr.msk.f32.vlgmr.msra.gmra.mrb[2].mxu1 %vm274_vm4, %v2191_v49  ;;  %v820_v40 = vrot.slane %v2212_v18, %v2452_v30 }
 0x159   :  { %512 = vmatprep.mubr.f32.mxu0 %v2310_v3  ;;  %583 = vmatprep.mubr.f32.mxu1 %v2310_v3 }
 0x15a   :  { %v195_v58 = vpop.permute.xlu1 %194  ;;  %2198 = vmatprep.subr.msk.mxu0 %vm278_vm2, %v228_v54  ;;  %v197_v59 = vpop.permute.xlu0 %196 }
 0x15b   :  { %v202_v60 = vsel %vm200_vm3, %v193_v51, %v195_v58  ;;  %v201_v61 = vsel %vm200_vm3, %v195_v58, %v197_v59  ;;  %v204_v62 = vsel %vm200_vm3, %v197_v59, %v191_v50  ;;  %v1014_v51 = vrot.slane %v2220_v38, %v2456_v32 }
 0x15c   :  { %v229_v63 = vmul.f32 %v218_v53, %v202_v60  ;;  %v227_v5 = vmul.f32 %v210_v55, %v204_v62  ;;  %v230_v6 = vmul.f32 %v222_v56, %v201_v61  ;;  %v1010_v55 = vrot.slane %v2220_v38, %v2452_v30  ;;  %v2228_v60 = vld [vmem:[%s2683_s7 + $0x5] ss:$8 sm:$0xf] }
 0x15d   :  { %v1020_v56 = vmul.f32 %v1006_v44, %v2405_v19  ;;  %v1019_v19 = vmul.f32 %v1002_v47, %v2399_v15  ;;  %v1022_v61 = vmul.f32 %v1014_v51, %v2407_v20 }
 0x15e   :  { %v591_v9 = vpop.permute.xlu1 %590  ;;  %2199 = vmatpush1.msk.msra.mxu0 %vm278_vm2, %v227_v5  ;;  %2201 = vmatprep.subr.msk.mxu1 %vm278_vm2, %v230_v6  ;;  %v593_v10 = vpop.permute.xlu0 %592  ;;  %v1021_v62 = vmul.f32 %v1010_v55, %v2401_v16  ;;  %v1217_v5 = vrot.slane %v2228_v60, %v2456_v32  ;;  %v1205_v6 = vrot.slane %v2228_v60, %v2454_v31 }
 0x15f   :  { %v601_v11 = vsel %vm598_vm5, %v591_v9, %v593_v10  ;;  %2202 = vmatpush1.msk.msra.mxu1 %vm278_vm2, %v229_v63  ;;  %v1209_v63 = vrot.slane %v2228_v60, %v2450_v27  ;;  %v1213_v16 = vrot.slane %v2228_v60, %v2452_v30 }
 0x160   :  { %v627_v13 = vmul.f32 %v613_v7, %v601_v11  ;;  %2200 = vmatmul.mubr.msk.f32.vlgmr.msra.gmra.mrb[2].mxu0 %vm274_vm4, %v231_v8  ;;  %2203 = vmatmul.mubr.msk.f32.vlgmr.msra.gmra.mrb[2].mxu1 %vm274_vm4, %v231_v8 }
 0x161   :  { %711 = vmatprep.mubr.f32.mxu0 %v2310_v3  ;;  %782 = vmatprep.mubr.f32.mxu1 %v2310_v3 }
 0x162   :  { %v595_v21 = vpop.permute.xlu1 %594  ;;  %2206 = vmatprep.subr.msk.mxu0 %vm278_vm2, %v627_v13  ;;  %v597_v22 = vpop.permute.xlu0 %596  ;;  %v2221_v13 = vld [vmem:[%s2684_s3 + $0x10] sm:$0xf] }
 0x163   :  { %v600_v23 = vsel %vm598_vm5, %v593_v10, %v595_v21  ;;  %v599_v24 = vsel %vm598_vm5, %v595_v21, %v597_v22  ;;  %v602_v26 = vsel %vm598_vm5, %v597_v22, %v591_v9  ;;  %v2236_v22 = vld [vmem:[%s2683_s7 + $0x6] ss:$8 sm:$0xf] }
 0x164   :  { %v628_v28 = vmul.f32 %v617_v12, %v600_v23  ;;  %v626_v29 = vmul.f32 %v609_v14, %v602_v26  ;;  %v629_v33 = vmul.f32 %v621_v17, %v599_v24  ;;  %v1412_v23 = vrot.slane %v2236_v22, %v2450_v27 }
 0x165   :  { %v1420_v24 = vrot.slane %v2236_v22, %v2456_v32 }
 0x166   :  { %v794_v36 = vpop.permute.xlu1 %793  ;;  %2207 = vmatpush1.msk.msra.mxu0 %vm278_vm2, %v626_v29  ;;  %2209 = vmatprep.subr.msk.mxu1 %vm278_vm2, %v629_v33  ;;  %v796_v37 = vpop.permute.xlu0 %795  ;;  %v1408_v29 = vrot.slane %v2236_v22, %v2454_v31 }
 0x167   :  { %v804_v39 = vsel %vm801_vm6, %v794_v36, %v796_v37  ;;  %2210 = vmatpush1.msk.msra.mxu1 %vm278_vm2, %v628_v28 }
 0x168   :  { %v830_v41 = vmul.f32 %v816_v34, %v804_v39  ;;  %2208 = vmatmul.mubr.msk.f32.vlgmr.msra.gmra.mrb[2].mxu0 %vm274_vm4, %v2205_v35  ;;  %2211 = vmatmul.mubr.msk.f32.vlgmr.msra.gmra.mrb[2].mxu1 %vm274_vm4, %v2205_v35  ;;  %v1416_v34 = vrot.slane %v2236_v22, %v2452_v30 }
 0x169   :  { %914 = vmatprep.mubr.f32.mxu0 %v2310_v3  ;;  %985 = vmatprep.mubr.f32.mxu1 %v2310_v3 }
 0x16a   :  { %v798_v45 = vpop.permute.xlu1 %797  ;;  %2214 = vmatprep.subr.msk.mxu0 %vm278_vm2, %v830_v41  ;;  %v800_v46 = vpop.permute.xlu0 %799 }
 0x16b   :  { %v803_v48 = vsel %vm801_vm6, %v796_v37, %v798_v45  ;;  %v802_v49 = vsel %vm801_vm6, %v798_v45, %v800_v46  ;;  %v805_v50 = vsel %vm801_vm6, %v800_v46, %v794_v36  ;;  %v2244_v45 = vld [vmem:[%s2683_s7 + $0x7] ss:$8 sm:$0xf] }
 0x16c   :  { %v831_v52 = vmul.f32 %v820_v40, %v803_v48  ;;  %v829_v53 = vmul.f32 %v812_v42, %v805_v50  ;;  %v832_v54 = vmul.f32 %v824_v43, %v802_v49  ;;  %v2229_v40 = vld [vmem:[%s2684_s3 + $0x14] sm:$0xf]  ;;  %v1615_v46 = vrot.slane %v2244_v45, %v2450_v27 }
 0x16d   :  { %v1623_v47 = vrot.slane %v2244_v45, %v2456_v32  ;;  %v1611_v50 = vrot.slane %v2244_v45, %v2454_v31 }
 0x16e   :  { %v1187_v58 = vpop.permute.xlu1 %1186  ;;  %2215 = vmatpush1.msk.msra.mxu0 %vm278_vm2, %v829_v53  ;;  %2217 = vmatprep.subr.msk.mxu1 %vm278_vm2, %v832_v54  ;;  %v1189_v59 = vpop.permute.xlu0 %1188 }
 0x16f   :  { %2218 = vmatpush1.msk.msra.mxu1 %vm278_vm2, %v831_v52  ;;  %2222 = vmatprep.subr.msk.mxu0 %vm278_vm2, %v1020_v56  ;;  %v1197_v9 = vsel %vm1194_vm7, %v1187_v58, %v1189_v59  ;;  %v1619_v52 = vrot.slane %v2244_v45, %v2452_v30 }
 0x170   :  { %2216 = vmatmul.mubr.msk.f32.vlgmr.msra.gmra.mrb[2].mxu0 %vm274_vm4, %v2213_v57  ;;  %2219 = vmatmul.mubr.msk.f32.vlgmr.msra.gmra.mrb[2].mxu1 %vm274_vm4, %v2213_v57  ;;  %v1222_v18 = vmul.f32 %v1205_v6, %v1197_v9 }
 0x171   :  { %2223 = vmatpush1.msk.msra.mxu0 %vm278_vm2, %v1019_v19  ;;  %2225 = vmatprep.subr.msk.mxu1 %vm278_vm2, %v1022_v61 }
 0x172   :  { %2226 = vmatpush1.msk.msra.mxu1 %vm278_vm2, %v1021_v62  ;;  %v1191_v15 = vpop.permute.xlu1 %1190  ;;  %v1193_v20 = vpop.permute.xlu0 %1192  ;;  %1104 = vmatprep.mubr.f32.mxu0 %v2310_v3  ;;  %v2252_v62 = vld [vmem:[%s2683_s7 + $0x20] ss:$8 sm:$0xf] }
 0x173   :  { %v1196_v7 = vsel %vm1194_vm7, %v1189_v59, %v1191_v15  ;;  %v1198_v8 = vsel %vm1194_vm7, %v1193_v20, %v1187_v58  ;;  %1175 = vmatprep.mubr.f32.mxu1 %v2310_v3  ;;  %v1195_v11 = vsel %vm1194_vm7, %v1191_v15, %v1193_v20  ;;  %v2237_v58 = vld [vmem:[%s2684_s3 + $0x18] sm:$0xf]  ;;  %v1814_v6 = vrot.slane %v2252_v62, %v2454_v31 }
 0x174   :  { %v1223_v10 = vmul.f32 %v1209_v63, %v1196_v7  ;;  %v1225_v12 = vmul.f32 %v1217_v5, %v1198_v8  ;;  %v1224_v21 = vmul.f32 %v1213_v16, %v1195_v11  ;;  %v1818_v63 = vrot.slane %v2252_v62, %v2450_v27 }
 0x175   :  { %v1826_v5 = vrot.slane %v2252_v62, %v2456_v32  ;;  %v1822_v16 = vrot.slane %v2252_v62, %v2452_v30  ;;  %v2253_v30 = vld [vmem:[%s2684_s3 + $0x20] sm:$0xf] }
 0x176   :  { %v1390_v14 = vpop.permute.xlu1 %1389  ;;  %2233 = vmatprep.subr.msk.mxu1 %vm278_vm2, %v1225_v12  ;;  %v1392_v17 = vpop.permute.xlu0 %1391  ;;  %2230 = vmatprep.subr.msk.mxu0 %vm278_vm2, %v1223_v10  ;;  %v2245_v10 = vld [vmem:[%s2684_s3 + $0x1c] sm:$0xf] }
 0x177   :  { %v1400_v36 = vsel %vm1397_vm8, %v1390_v14, %v1392_v17 }
 0x178   :  { %2224 = vmatmul.mubr.msk.f32.vlgmr.msra.gmra.mrb[2].mxu0 %vm274_vm4, %v2221_v13  ;;  %2227 = vmatmul.mubr.msk.f32.vlgmr.msra.gmra.mrb[2].mxu1 %vm274_vm4, %v2221_v13  ;;  %v1425_v43 = vmul.f32 %v1408_v29, %v1400_v36 }
 0x179   :  { %2231 = vmatpush1.msk.msra.mxu0 %vm278_vm2, %v1222_v18  ;;  %2234 = vmatpush1.msk.msra.mxu1 %vm278_vm2, %v1224_v21 }
 0x17a   :  { %v1394_v26 = vpop.permute.xlu1 %1393  ;;  %v1396_v28 = vpop.permute.xlu0 %1395  ;;  %1307 = vmatprep.mubr.f32.mxu0 %v2310_v3  ;;  %1378 = vmatprep.mubr.f32.mxu1 %v2310_v3 }
 0x17b   :  { %v1399_v33 = vsel %vm1397_vm8, %v1392_v17, %v1394_v26  ;;  %v1401_v35 = vsel %vm1397_vm8, %v1396_v28, %v1390_v14  ;;  %v1398_v38 = vsel %vm1397_vm8, %v1394_v26, %v1396_v28 }
 0x17c   :  { %v1426_v37 = vmul.f32 %v1412_v23, %v1399_v33  ;;  %v1428_v39 = vmul.f32 %v1420_v24, %v1401_v35  ;;  %v1427_v44 = vmul.f32 %v1416_v34, %v1398_v38  ;;  %v2012_v34 = vld [vmem:[%s2685_s5] sm:$0xff] }
 0x17e   :  { %v1593_v41 = vpop.permute.xlu1 %1592  ;;  %2241 = vmatprep.subr.msk.mxu1 %vm278_vm2, %v1428_v39  ;;  %v1595_v42 = vpop.permute.xlu0 %1594  ;;  %2238 = vmatprep.subr.msk.mxu0 %vm278_vm2, %v1426_v37 }
 0x17f   :  { %v1603_v54 = vsel %vm1600_vm9, %v1593_v41, %v1595_v42 }
 0x180   :  { %2232 = vmatmul.mubr.msk.f32.vlgmr.msra.gmra.mrb[2].mxu0 %vm274_vm4, %v2229_v40  ;;  %2235 = vmatmul.mubr.msk.f32.vlgmr.msra.gmra.mrb[2].mxu1 %vm274_vm4, %v2229_v40  ;;  %v1628_v19 = vmul.f32 %v1611_v50, %v1603_v54 }
 0x181   :  { %2239 = vmatpush1.msk.msra.mxu0 %vm278_vm2, %v1425_v43  ;;  %2242 = vmatpush1.msk.msra.mxu1 %vm278_vm2, %v1427_v44 }
 0x182   :  { %v1597_v48 = vpop.permute.xlu1 %1596  ;;  %v1599_v49 = vpop.permute.xlu0 %1598  ;;  %1510 = vmatprep.mubr.f32.mxu0 %v2310_v3  ;;  %1581 = vmatprep.mubr.f32.mxu1 %v2310_v3 }
 0x183   :  { %v1602_v51 = vsel %vm1600_vm9, %v1595_v42, %v1597_v48  ;;  %v1604_v53 = vsel %vm1600_vm9, %v1599_v49, %v1593_v41  ;;  %v1601_v56 = vsel %vm1600_vm9, %v1597_v48, %v1599_v49 }
 0x184   :  { %v1629_v55 = vmul.f32 %v1615_v46, %v1602_v51  ;;  %v1631_v57 = vmul.f32 %v1623_v47, %v1604_v53  ;;  %v1630_v61 = vmul.f32 %v1619_v52, %v1601_v56 }
 0x186   :  { %v1796_v59 = vpop.permute.xlu1 %1795  ;;  %2249 = vmatprep.subr.msk.mxu1 %vm278_vm2, %v1631_v57  ;;  %v1798_v60 = vpop.permute.xlu0 %1797  ;;  %2246 = vmatprep.subr.msk.mxu0 %vm278_vm2, %v1629_v55 }
 0x187   :  { %v1806_v8 = vsel %vm1803_vm10, %v1796_v59, %v1798_v60 }
 0x188   :  { %2240 = vmatmul.mubr.msk.f32.vlgmr.msra.gmra.mrb[2].mxu0 %vm274_vm4, %v2237_v58  ;;  %2243 = vmatmul.mubr.msk.f32.vlgmr.msra.gmra.mrb[2].mxu1 %vm274_vm4, %v2237_v58  ;;  %v1831_v11 = vmul.f32 %v1814_v6, %v1806_v8 }
 0x189   :  { %2247 = vmatpush1.msk.msra.mxu0 %vm278_vm2, %v1628_v19  ;;  %2250 = vmatpush1.msk.msra.mxu1 %vm278_vm2, %v1630_v61 }
 0x18a   :  { %v1800_v15 = vpop.permute.xlu1 %1799  ;;  %v1802_v20 = vpop.permute.xlu0 %1801  ;;  %1713 = vmatprep.mubr.f32.mxu0 %v2310_v3  ;;  %1784 = vmatprep.mubr.f32.mxu1 %v2310_v3 }
 0x18b   :  { %v1805_v7 = vsel %vm1803_vm10, %v1798_v60, %v1800_v15  ;;  %v1807_v27 = vsel %vm1803_vm10, %v1802_v20, %v1796_v59  ;;  %v1804_v9 = vsel %vm1803_vm10, %v1800_v15, %v1802_v20 }
 0x18c   :  { %v1832_v32 = vmul.f32 %v1818_v63, %v1805_v7  ;;  %v1834_v25 = vmul.f32 %v1826_v5, %v1807_v27  ;;  %v1833_v12 = vmul.f32 %v1822_v16, %v1804_v9 }
 0x18e   :  { %2254 = vmatprep.subr.msk.mxu0 %vm278_vm2, %v1832_v32  ;;  %2257 = vmatprep.subr.msk.mxu1 %vm278_vm2, %v1834_v25 }
 0x190   :  { %2248 = vmatmul.mubr.msk.f32.vlgmr.msra.gmra.mrb[2].mxu0 %vm274_vm4, %v2245_v10  ;;  %2251 = vmatmul.mubr.msk.f32.vlgmr.msra.gmra.mrb[2].mxu1 %vm274_vm4, %v2245_v10 }
 0x191   :  { %2255 = vmatpush1.msk.msra.mxu0 %vm278_vm2, %v1831_v11  ;;  %2258 = vmatpush1.msk.msra.mxu1 %vm278_vm2, %v1833_v12 }
 0x192   :  { %1916 = vmatprep.mubr.f32.mxu0 %v2310_v3  ;;  %1987 = vmatprep.mubr.f32.mxu1 %v2310_v3 }
 0x198   :  { %2256 = vmatmul.mubr.msk.f32.vlgmr.msra.gmra.mrb[2].mxu0 %vm274_vm4, %v2253_v30  ;;  %2259 = vmatmul.mubr.msk.f32.vlgmr.msra.gmra.mrb[2].mxu1 %vm274_vm4, %v2253_v30 }
 0x199   :  { %2098 = vmatprep.mubr.f32.mxu0 %v2310_v3  ;;  %2169 = vmatprep.mubr.f32.mxu1 %v2310_v3 }
 0x19b   :  { %v2002_v31 = vpop.permute.xlu1 %2001  ;;  %v2017_v3 = vpop.permute.xlu0 %2016 }
 0x26b   :  { %v1918_v13 = vpop.f32.mrb[2].mxu0  ;;  %v1989_v14 = vpop.f32.mrb[2].mxu1 }
 0x26c   :  { %v2004_v17 = vadd.f32 %v2002_v31, %v1918_v13  ;;  %v2006_v18 = vadd.f32 %v2002_v31, %v1989_v14  ;;  %v1920_v21 = vpop.f32.mrb[3].mxu0  ;;  %v1991_v22 = vpop.f32.mrb[3].mxu1 }
 0x26d   :  { %v2005_v23 = vadd.f32 %v2002_v31, %v1920_v21  ;;  %v2007_v24 = vadd.f32 %v2002_v31, %v1991_v22 }
 0x26e   :  { %v2008_v29 = vmax.f32 %v2004_v17, 0.0  ;;  %v2010_v33 = vmax.f32 %v2006_v18, 0.0 }
 0x26f   :  { %v2009_v26 = vmax.f32 %v2005_v23, 0.0  ;;  %v2011_v28 = vmax.f32 %v2007_v24, 0.0 }
 0x271   :  { %2260 = vmatprep.subr.msk.mxu0 %vm278_vm2, %v2009_v26  ;;  %2263 = vmatprep.subr.msk.mxu1 %vm278_vm2, %v2011_v28 }
 0x272   :  { %2261 = vmatpush1.msk.msra.mxu0 %vm278_vm2, %v2008_v29  ;;  %2264 = vmatpush1.msk.msra.mxu1 %vm278_vm2, %v2010_v33 }
 0x273   :  { %2262 = vmatmul.mubr.msk.f32.vlgmr.msra.gmra.mrb[4].mxu0 %vm274_vm4, %v2012_v34  ;;  %2265 = vmatmul.mubr.msk.f32.vlgmr.msra.gmra.mrb[4].mxu1 %vm274_vm4, %v2012_v34 }
 0x346   :  { %v2100_v35 = vpop.f32.mrb[4].mxu0  ;;  %v2171_v36 = vpop.f32.mrb[4].mxu1 }
 0x347   :  { %v2101_v37 = vadd.f32 %v2100_v35, %v2017_v3  ;;  %v2172_v38 = vadd.f32 %v2171_v36, %v2017_v3  ;;  %v2102_v39 = vpop.f32.mrb[5].mxu0  ;;  %v2173_v40 = vpop.f32.mrb[5].mxu1 }
 0x348   :  { %v2103_v41 = vadd.f32 %v2102_v39, %v2017_v3  ;;  %v2174_v42 = vadd.f32 %v2173_v40, %v2017_v3 }
 0x349   :  { %v2176_v43 = vadd.f32 %v2101_v37, %v2378_v2  ;;  %v2178_v44 = vadd.f32 %v2172_v38, %v2387_v4 }
 0x34a   :  { %v2177_v45 = vadd.f32 %v2103_v41, %v2368_v0  ;;  %v2179_v46 = vadd.f32 %v2174_v42, %v2373_v1 }
 0x34b   :  { %2180 = vst [vmem:[%s2686_s8] sm:$0xff] %v2176_v43  ;;  %2182 = vst [vmem:[%s2686_s8 + $0x10] sm:$0xff] %v2178_v44 }
 0x34c   :  { %2181 = vst [vmem:[%s2686_s8 + $0x8] sm:$0xff] %v2177_v45  ;;  %2183 = vst [vmem:[%s2686_s8 + $0x18] sm:$0xff] %v2179_v46 }

</bundles_post_ra>
